<compile_context>
chip_gen: v7x
topology: tpu7x:2x2x1
jax: 0.10.0
libtpu: 0.0.40
codegen_flags: <defaults>
</compile_context>

<pallas_src>
import jax
import jax.numpy as jnp
import numpy as np
from jax import lax
from jax.experimental import pallas as pl
from jax.experimental.pallas import tpu as pltpu

# ---- model hyperparameters (small, consistent with the module) --------------
B = 2          # batch
L = 8          # sequence length
H = 32         # hid_dim
N_HEADS = 4    # n_heads
HEAD_DIM = H // N_HEADS
PF = 64        # pf_dim
BL = B * L
INV_SCALE = float(1.0 / np.sqrt(HEAD_DIM))
LN_EPS = 1e-5
NEG = -1e10

# rows of the packed [8, 4*H] vector-parameter slab (one vreg, one DMA)
_QKVB, _BO, _LN1G, _LN1B, _LN2G, _LN2B, _B1, _B2 = range(8)


def encoder_layer_kernel(src_ref, mb_ref, wattn_ref, wffn_ref, vec_ref,
                         out_ref, attn_ref):
    src = src_ref[...]                        # [BL, H]  f32
    vec = vec_ref[...]                        # [8, 4H]  f32
    wattn = wattn_ref[...]                    # [H, 4H]  bf16: Wq*scale|Wk|Wv|Wo

    # ---- fused Q/K/V(/O) projection: one MXU dot, one bias add, one transpose
    qkv = jnp.dot(src.astype(jnp.bfloat16), wattn,
                  preferred_element_type=jnp.float32)            # [BL, 4H]
    qkv = qkv + vec[_QKVB]                    # bq*scale | bk | bv | 0
    qkvT = qkv.T.astype(jnp.bfloat16)         # [4H, BL]  (single transpose)

    # head split along the sublane axis (layout-preserving reshapes)
    qT = qkvT[0 * H:1 * H].reshape(N_HEADS, HEAD_DIM, BL)
    kT = qkvT[1 * H:2 * H].reshape(N_HEADS, HEAD_DIM, BL)
    vT = qkvT[2 * H:3 * H].reshape(N_HEADS, HEAD_DIM, BL)

    # ---- block-diagonal mask / pair-bias over the full 16-token axis --------
    mb = mb_ref[...]                          # [2, B, L, L]: [0]=mask, [1]=pair bias
    cb = jnp.where(mb[0] > 0.0, mb[1], NEG)               # [B, L, L]
    negf = jnp.full((L, L), 2.0 * NEG, jnp.float32)       # cross-batch: < -1e10
    zf = jnp.zeros((L, L), jnp.float32)
    bias_full = jnp.concatenate(
        [jnp.concatenate([cb[0], negf], axis=1),
         jnp.concatenate([negf, cb[1]], axis=1)], axis=0)  # [BL, BL]
    valid_full = jnp.concatenate(
        [jnp.concatenate([mb[0, 0], zf], axis=1),
         jnp.concatenate([zf, mb[0, 1]], axis=1)], axis=0)  # [BL, BL]

    # ---- attention: ONE head-batched dot over all 16 tokens -----------------
    energy = lax.dot_general(qT, kT, (((1,), (1,)), ((0,), (0,))),
                             preferred_element_type=jnp.float32)  # [NH, BL, BL]
    e = jnp.where(valid_full[None] > 0.0,
                  energy + bias_full[None], bias_full[None])
    m = jnp.max(e, axis=-1, keepdims=True)
    p = jnp.exp(e - m)
    attn = p / jnp.sum(p, axis=-1, keepdims=True)          # exact divide (exposed output)

    # exposed attention weights in the PyTorch [B, n_heads, L, L] layout
    attn_ref[0] = attn[:, 0:L, 0:L].astype(attn_ref.dtype)
    attn_ref[1] = attn[:, L:BL, L:BL].astype(attn_ref.dtype)

    # ---- context + fc_o (cross-batch attention entries are exactly zero) ----
    ctxT = lax.dot_general(vT, attn.astype(jnp.bfloat16),
                           (((2,), (2,)), ((0,), (0,))),
                           preferred_element_type=jnp.float32)    # [NH, HD, BL]
    ctxT = ctxT.reshape(H, BL).astype(jnp.bfloat16)               # merge heads (free)
    x = lax.dot_general(ctxT, wattn[:, 3 * H:4 * H],
                        (((0,), (0,)), ((), ())),
                        preferred_element_type=jnp.float32)       # [BL, H]
    x = x + vec[_BO, :H]

    # ---- residual + self_attn_layer_norm (f32) -------------------------------
    y = src + x
    mu = jnp.mean(y, axis=-1, keepdims=True)
    d = y - mu
    var = jnp.mean(d * d, axis=-1, keepdims=True)
    y = d * lax.rsqrt(var + LN_EPS) * vec[_LN1G, :H] + vec[_LN1B, :H]

    # ---- position-wise feed-forward (fused [H+PF, PF] weight slab) ----------
    wffn = wffn_ref[...]                      # [H+PF, PF] bf16: w1 over zero-padded w2
    f = jnp.dot(y.astype(jnp.bfloat16), wffn[:H],
                preferred_element_type=jnp.float32)               # [BL, PF]
    f = jnp.maximum(f + vec[_B1, :PF], 0.0)
    g = jnp.dot(f.astype(jnp.bfloat16), wffn[H:],
                preferred_element_type=jnp.float32)               # [BL, PF]
    g = g[:, :H] + vec[_B2, :H]                                   # cols H: are zero

    # ---- residual + ff_layer_norm --------------------------------------------
    z = y + g
    mu2 = jnp.mean(z, axis=-1, keepdims=True)
    d2 = z - mu2
    var2 = jnp.mean(d2 * d2, axis=-1, keepdims=True)
    z = d2 * lax.rsqrt(var2 + LN_EPS) * vec[_LN2G, :H] + vec[_LN2B, :H]

    out_ref[...] = z.astype(out_ref.dtype)


def _full_spec(shape):
    zeros = (0,) * len(shape)
    return pl.BlockSpec(shape, lambda i, z=zeros: z)


def pack_params(params):
    """One-time parameter packing (hoisted out of the per-call hot path)."""
    (wq, bq, wk, bk, wv, bv, wo, bo,
     ln1g, ln1b, w1, b1, w2, b2, ln2g, ln2b) = params
    # 1/sqrt(head_dim) folded into Wq / bq so the kernel never scales.
    w_attn = jnp.concatenate([wq * INV_SCALE, wk, wv, wo],
                             axis=1).astype(jnp.bfloat16)          # [H, 4H]
    w_ffn = jnp.concatenate([w1, jnp.pad(w2, ((0, 0), (0, PF - H)))],
                            axis=0).astype(jnp.bfloat16)           # [H+PF, PF]
    vec = jnp.zeros((8, 4 * H), jnp.float32)
    vec = vec.at[_QKVB].set(jnp.concatenate(
        [bq.reshape(-1) * INV_SCALE, bk.reshape(-1), bv.reshape(-1),
         jnp.zeros((H,), jnp.float32)]))
    vec = vec.at[_BO, :H].set(bo.reshape(-1))
    vec = vec.at[_LN1G, :H].set(ln1g.reshape(-1))
    vec = vec.at[_LN1B, :H].set(ln1b.reshape(-1))
    vec = vec.at[_LN2G, :H].set(ln2g.reshape(-1))
    vec = vec.at[_LN2B, :H].set(ln2b.reshape(-1))
    vec = vec.at[_B1, :PF].set(b1.reshape(-1))
    vec = vec.at[_B2, :H].set(b2.reshape(-1))
    return w_attn, w_ffn, vec


@jax.jit
def encoder_layer(src, src_mask, batch_matrix, packed):
    """src: [B,L,H] f32, src_mask/batch_matrix: [B,L,L] f32, packed = pack_params(...)."""
    w_attn, w_ffn, vec = packed
    src2 = src.reshape(BL, H)                              # free reshape
    maskbias = jnp.stack([src_mask, batch_matrix], axis=0)  # [2,B,L,L] -> one DMA

    grid_spec = pltpu.PrefetchScalarGridSpec(
        num_scalar_prefetch=0,
        grid=(1,),                       # single invocation: overhead paid once
        in_specs=[
            _full_spec((BL, H)),         # src (flattened)
            _full_spec((2, B, L, L)),    # mask | batch_matrix
            _full_spec((H, 4 * H)),      # fused Wq|Wk|Wv|Wo (bf16, lane-dense)
            _full_spec((H + PF, PF)),    # fused W1 / padded W2 (bf16)
            _full_spec((8, 4 * H)),      # packed biases / LN params (one vreg)
        ],
        out_specs=[
            _full_spec((BL, H)),
            _full_spec((B, N_HEADS, L, L)),
        ],
    )

    out2, attn = pl.pallas_call(
        encoder_layer_kernel,
        out_shape=(
            jax.ShapeDtypeStruct((BL, H), jnp.float32),
            jax.ShapeDtypeStruct((B, N_HEADS, L, L), jnp.float32),
        ),
        grid_spec=grid_spec,
        compiler_params=pltpu.CompilerParams(dimension_semantics=("arbitrary",)),
    )(src2, maskbias, w_attn, w_ffn, vec)

    return out2.reshape(B, L, H), attn


# --------------------------- pure-JAX reference --------------------------------
def encoder_layer_ref(src, src_mask, batch_matrix, params):
    (wq, bq, wk, bk, wv, bv, wo, bo,
     ln1g, ln1b, w1, b1, w2, b2, ln2g, ln2b) = params

    def ln(x, g, b):
        mu = jnp.mean(x, axis=-1, keepdims=True)
        var = jnp.mean((x - mu) ** 2, axis=-1, keepdims=True)
        return (x - mu) * jax.lax.rsqrt(var + LN_EPS) * g + b

    q = src @ wq + bq
    k = src @ wk + bk
    v = src @ wv + bv
    q = q.reshape(B, L, N_HEADS, HEAD_DIM).transpose(0, 2, 1, 3)
    k = k.reshape(B, L, N_HEADS, HEAD_DIM).transpose(0, 2, 1, 3)
    v = v.reshape(B, L, N_HEADS, HEAD_DIM).transpose(0, 2, 1, 3)
    energy = jnp.einsum("bhqd,bhkd->bhqk", q, k) * INV_SCALE
    energy = energy + batch_matrix[:, None]
    energy = jnp.where(src_mask[:, None] > 0.0, energy, -1e10)
    attn = jax.nn.softmax(energy, axis=-1)
    x = jnp.einsum("bhqk,bhkd->bhqd", attn, v)
    x = x.transpose(0, 2, 1, 3).reshape(B, L, H) @ wo + bo
    y = ln(src + x, ln1g, ln1b)
    f = jnp.maximum(y @ w1 + b1, 0.0) @ w2 + b2
    z = ln(y + f, ln2g, ln2b)
    return z, attn


def init_params(key):
    keys = jax.random.split(key, 8)
    s = 0.1
    wq = s * jax.random.normal(keys[0], (H, H), jnp.float32)
    wk = s * jax.random.normal(keys[1], (H, H), jnp.float32)
    wv = s * jax.random.normal(keys[2], (H, H), jnp.float32)
    wo = s * jax.random.normal(keys[3], (H, H), jnp.float32)
    w1 = s * jax.random.normal(keys[4], (H, PF), jnp.float32)
    w2 = s * jax.random.normal(keys[5], (PF, H), jnp.float32)
    bq = 0.01 * jnp.ones((1, H), jnp.float32)
    bk = -0.01 * jnp.ones((1, H), jnp.float32)
    bv = 0.02 * jnp.ones((1, H), jnp.float32)
    bo = jnp.zeros((1, H), jnp.float32)
    b1 = 0.01 * jnp.ones((1, PF), jnp.float32)
    b2 = jnp.zeros((1, H), jnp.float32)
    ln1g = jnp.ones((1, H), jnp.float32)
    ln1b = jnp.zeros((1, H), jnp.float32)
    ln2g = jnp.ones((1, H), jnp.float32)
    ln2b = jnp.zeros((1, H), jnp.float32)
    return (wq, bq, wk, bk, wv, bv, wo, bo,
            ln1g, ln1b, w1, b1, w2, b2, ln2g, ln2b)


if __name__ == "__main__":
    key = jax.random.PRNGKey(0)
    k_src, k_bmat, k_par = jax.random.split(key, 3)

    src = jax.random.normal(k_src, (B, L, H), jnp.float32)
    batch_matrix = 0.1 * jax.random.normal(k_bmat, (B, L, L), jnp.float32)

    # padding mask: batch 0 fully valid, batch 1 has last two positions padded.
    key_mask = jnp.ones((B, L), jnp.float32)
    key_mask = key_mask.at[1, -2:].set(0.0)
    src_mask = jnp.broadcast_to(key_mask[:, None, :], (B, L, L)).astype(jnp.float32)

    params = init_params(k_par)
    packed = pack_params(params)      # hoisted: packed once, reused every call

    out, attn = encoder_layer(src, src_mask, batch_matrix, packed)
    out = jax.block_until_ready(out)
    attn = jax.block_until_ready(attn)

    ref_out, ref_attn = encoder_layer_ref(src, src_mask, batch_matrix, params)
    # bf16 MXU operands (with f32 accumulation) set the accuracy budget;
    # elementwise math (softmax, LayerNorm, residuals) stays f32.
    np.testing.assert_allclose(np.asarray(out), np.asarray(ref_out), rtol=1e-2, atol=1e-2)
    np.testing.assert_allclose(np.asarray(attn), np.asarray(ref_attn), rtol=1e-2, atol=1e-2)

    print("KERNEL_OK")
</pallas_src>

<mosaic_0001>
module attributes {stable_mosaic.version = 11 : i64} {
  func.func @encoder_layer_kernel(%arg0: i32, %arg1: memref<16x32xf32, #tpu.memory_space<vmem>>, %arg2: memref<2x2x8x8xf32, #tpu.memory_space<vmem>>, %arg3: memref<32x128xbf16, #tpu.memory_space<vmem>>, %arg4: memref<96x64xbf16, #tpu.memory_space<vmem>>, %arg5: memref<8x128xf32, #tpu.memory_space<vmem>>, %arg6: memref<16x32xf32, #tpu.memory_space<vmem>>, %arg7: memref<2x4x8x8xf32, #tpu.memory_space<vmem>>) attributes {dimension_semantics = [#tpu.dimension_semantics<arbitrary>], iteration_bounds = array<i64: 1>, scalar_prefetch = 0 : i64, scratch_operands = 0 : i64, tpu.core_type = #tpu.core_type<tc>, window_params = [{pipeline_mode = #tpu.pipeline_mode<synchronous>, transform_indices = @transform_0, window_bounds = array<i64: 16, 32>}, {pipeline_mode = #tpu.pipeline_mode<synchronous>, transform_indices = @transform_1, window_bounds = array<i64: 2, 2, 8, 8>}, {pipeline_mode = #tpu.pipeline_mode<synchronous>, transform_indices = @transform_2, window_bounds = array<i64: 32, 128>}, {pipeline_mode = #tpu.pipeline_mode<synchronous>, transform_indices = @transform_3, window_bounds = array<i64: 96, 64>}, {pipeline_mode = #tpu.pipeline_mode<synchronous>, transform_indices = @transform_4, window_bounds = array<i64: 8, 128>}, {pipeline_mode = #tpu.pipeline_mode<synchronous>, transform_indices = @transform_5, window_bounds = array<i64: 16, 32>}, {pipeline_mode = #tpu.pipeline_mode<synchronous>, transform_indices = @transform_6, window_bounds = array<i64: 2, 4, 8, 8>}]} {
    %c0 = arith.constant 0 : index
    %c0_0 = arith.constant 0 : index
    %0 = vector.load %arg1[%c0, %c0_0] : memref<16x32xf32, #tpu.memory_space<vmem>>, vector<16x32xf32>
    %c0_1 = arith.constant 0 : index
    %c0_2 = arith.constant 0 : index
    %1 = vector.load %arg5[%c0_1, %c0_2] : memref<8x128xf32, #tpu.memory_space<vmem>>, vector<8x128xf32>
    %c0_3 = arith.constant 0 : index
    %c0_4 = arith.constant 0 : index
    %2 = vector.load %arg3[%c0_3, %c0_4] : memref<32x128xbf16, #tpu.memory_space<vmem>>, vector<32x128xbf16>
    %3 = arith.truncf %0 : vector<16x32xf32> to vector<16x32xbf16>
    %cst = arith.constant dense<0.000000e+00> : vector<16x128xf32>
    %4 = tpu.matmul %3, %2, %cst {dimension_numbers = #tpu.dot_dimension_numbers<[1], [0], [0], [1], [0, 0, 1, 1], [], []>} : vector<16x32xbf16>, vector<32x128xbf16>, vector<16x128xf32> -> vector<16x128xf32>
    %5 = vector.extract_strided_slice %1 {offsets = [0, 0], sizes = [1, 128], strides = [1, 1]} : vector<8x128xf32> to vector<1x128xf32>
    %6 = vector.shape_cast %5 : vector<1x128xf32> to vector<128xf32>
    %7 = vector.shape_cast %6 : vector<128xf32> to vector<1x128xf32>
    %8 = vector.broadcast %7 : vector<1x128xf32> to vector<16x128xf32>
    %9 = arith.addf %4, %8 : vector<16x128xf32>
    %10 = tpu.transpose %9, [1, 0] : vector<16x128xf32> -> vector<128x16xf32>
    %11 = arith.truncf %10 : vector<128x16xf32> to vector<128x16xbf16>
    %12 = vector.extract_strided_slice %11 {offsets = [0, 0], sizes = [32, 16], strides = [1, 1]} : vector<128x16xbf16> to vector<32x16xbf16>
    %13 = vector.shape_cast %12 : vector<32x16xbf16> to vector<4x8x16xbf16>
    %14 = vector.extract_strided_slice %11 {offsets = [32, 0], sizes = [32, 16], strides = [1, 1]} : vector<128x16xbf16> to vector<32x16xbf16>
    %15 = vector.shape_cast %14 : vector<32x16xbf16> to vector<4x8x16xbf16>
    %16 = vector.extract_strided_slice %11 {offsets = [64, 0], sizes = [32, 16], strides = [1, 1]} : vector<128x16xbf16> to vector<32x16xbf16>
    %17 = vector.shape_cast %16 : vector<32x16xbf16> to vector<4x8x16xbf16>
    %c0_5 = arith.constant 0 : index
    %c0_6 = arith.constant 0 : index
    %c0_7 = arith.constant 0 : index
    %c0_8 = arith.constant 0 : index
    %18 = vector.load %arg2[%c0_5, %c0_6, %c0_7, %c0_8] : memref<2x2x8x8xf32, #tpu.memory_space<vmem>>, vector<2x2x8x8xf32>
    %19 = vector.extract_strided_slice %18 {offsets = [0, 0, 0, 0], sizes = [1, 2, 8, 8], strides = [1, 1, 1, 1]} : vector<2x2x8x8xf32> to vector<1x2x8x8xf32>
    %20 = vector.shape_cast %19 : vector<1x2x8x8xf32> to vector<2x8x8xf32>
    %cst_9 = arith.constant 0.000000e+00 : f32
    %21 = vector.broadcast %cst_9 : f32 to vector<2x8x8xf32>
    %22 = arith.cmpf ogt, %20, %21 : vector<2x8x8xf32>
    %23 = vector.extract_strided_slice %18 {offsets = [1, 0, 0, 0], sizes = [1, 2, 8, 8], strides = [1, 1, 1, 1]} : vector<2x2x8x8xf32> to vector<1x2x8x8xf32>
    %24 = vector.shape_cast %23 : vector<1x2x8x8xf32> to vector<2x8x8xf32>
    %cst_10 = arith.constant -1.000000e+10 : f32
    %25 = vector.broadcast %cst_10 : f32 to vector<2x8x8xf32>
    %26 = arith.select %22, %24, %25 : vector<2x8x8xi1>, vector<2x8x8xf32>
    %cst_11 = arith.constant -2.000000e+10 : f32
    %27 = vector.broadcast %cst_11 : f32 to vector<8x8xf32>
    %cst_12 = arith.constant 0.000000e+00 : f32
    %28 = vector.broadcast %cst_12 : f32 to vector<8x8xf32>
    %29 = vector.extract_strided_slice %26 {offsets = [0, 0, 0], sizes = [1, 8, 8], strides = [1, 1, 1]} : vector<2x8x8xf32> to vector<1x8x8xf32>
    %30 = vector.shape_cast %29 : vector<1x8x8xf32> to vector<8x8xf32>
    %31 = tpu.concatenate %30, %27 in 1 : vector<8x8xf32>, vector<8x8xf32> -> vector<8x16xf32>
    %32 = vector.extract_strided_slice %26 {offsets = [1, 0, 0], sizes = [1, 8, 8], strides = [1, 1, 1]} : vector<2x8x8xf32> to vector<1x8x8xf32>
    %33 = vector.shape_cast %32 : vector<1x8x8xf32> to vector<8x8xf32>
    %34 = tpu.concatenate %27, %33 in 1 : vector<8x8xf32>, vector<8x8xf32> -> vector<8x16xf32>
    %35 = tpu.concatenate %31, %34 in 0 : vector<8x16xf32>, vector<8x16xf32> -> vector<16x16xf32>
    %36 = vector.extract_strided_slice %18 {offsets = [0, 0, 0, 0], sizes = [1, 1, 8, 8], strides = [1, 1, 1, 1]} : vector<2x2x8x8xf32> to vector<1x1x8x8xf32>
    %37 = vector.shape_cast %36 : vector<1x1x8x8xf32> to vector<8x8xf32>
    %38 = tpu.concatenate %37, %28 in 1 : vector<8x8xf32>, vector<8x8xf32> -> vector<8x16xf32>
    %39 = vector.extract_strided_slice %18 {offsets = [0, 1, 0, 0], sizes = [1, 1, 8, 8], strides = [1, 1, 1, 1]} : vector<2x2x8x8xf32> to vector<1x1x8x8xf32>
    %40 = vector.shape_cast %39 : vector<1x1x8x8xf32> to vector<8x8xf32>
    %41 = tpu.concatenate %28, %40 in 1 : vector<8x8xf32>, vector<8x8xf32> -> vector<8x16xf32>
    %42 = tpu.concatenate %38, %41 in 0 : vector<8x16xf32>, vector<8x16xf32> -> vector<16x16xf32>
    %cst_13 = arith.constant dense<0.000000e+00> : vector<4x16x16xf32>
    %43 = tpu.matmul %13, %15, %cst_13 {dimension_numbers = #tpu.dot_dimension_numbers<[1], [1], [2], [2], [0, 0, 0, 2, 1, 2], [0], [0]>} : vector<4x8x16xbf16>, vector<4x8x16xbf16>, vector<4x16x16xf32> -> vector<4x16x16xf32>
    %44 = vector.shape_cast %42 : vector<16x16xf32> to vector<1x16x16xf32>
    %cst_14 = arith.constant 0.000000e+00 : f32
    %45 = vector.broadcast %cst_14 : f32 to vector<1x16x16xf32>
    %46 = arith.cmpf ogt, %44, %45 : vector<1x16x16xf32>
    %47 = vector.shape_cast %35 : vector<16x16xf32> to vector<1x16x16xf32>
    %48 = vector.broadcast %47 : vector<1x16x16xf32> to vector<4x16x16xf32>
    %49 = arith.addf %43, %48 : vector<4x16x16xf32>
    %50 = vector.shape_cast %35 : vector<16x16xf32> to vector<1x16x16xf32>
    %51 = vector.shape_cast %46 : vector<1x16x16xi1> to vector<1x16x16xi1>
    %52 = vector.broadcast %51 : vector<1x16x16xi1> to vector<4x16x16xi1>
    %53 = vector.shape_cast %50 : vector<1x16x16xf32> to vector<1x16x16xf32>
    %54 = vector.broadcast %53 : vector<1x16x16xf32> to vector<4x16x16xf32>
    %55 = arith.select %52, %49, %54 : vector<4x16x16xi1>, vector<4x16x16xf32>
    %cst_15 = arith.constant dense<0xFF800000> : vector<4x16xf32>
    %56 = vector.multi_reduction <maximumf>, %55, %cst_15 [2] : vector<4x16x16xf32> to vector<4x16xf32>
    %57 = vector.shape_cast %56 : vector<4x16xf32> to vector<4x16x1xf32>
    %58 = vector.broadcast %57 : vector<4x16x1xf32> to vector<4x16x16xf32>
    %59 = arith.subf %55, %58 : vector<4x16x16xf32>
    %60 = math.exp %59 : vector<4x16x16xf32>
    %cst_16 = arith.constant dense<0.000000e+00> : vector<4x16xf32>
    %61 = vector.multi_reduction <add>, %60, %cst_16 [2] : vector<4x16x16xf32> to vector<4x16xf32>
    %62 = vector.shape_cast %61 : vector<4x16xf32> to vector<4x16x1xf32>
    %63 = vector.broadcast %62 : vector<4x16x1xf32> to vector<4x16x16xf32>
    %64 = arith.divf %60, %63 : vector<4x16x16xf32>
    %65 = vector.extract_strided_slice %64 {offsets = [0, 0, 0], sizes = [4, 8, 8], strides = [1, 1, 1]} : vector<4x16x16xf32> to vector<4x8x8xf32>
    %c0_17 = arith.constant 0 : index
    %c0_18 = arith.constant 0 : index
    %c0_19 = arith.constant 0 : index
    %c0_20 = arith.constant 0 : index
    %66 = vector.load %arg7[%c0_17, %c0_18, %c0_19, %c0_20] : memref<2x4x8x8xf32, #tpu.memory_space<vmem>>, vector<1x4x8x8xf32>
    %67 = vector.shape_cast %66 : vector<1x4x8x8xf32> to vector<4x8x8xf32>
    %68 = vector.shape_cast %65 : vector<4x8x8xf32> to vector<1x4x8x8xf32>
    tpu.vector_store %arg7[%c0_17, %c0_18, %c0_19, %c0_20], %68 {strides = array<i32>} : memref<2x4x8x8xf32, #tpu.memory_space<vmem>>, vector<1x4x8x8xf32>,
    %69 = vector.extract_strided_slice %64 {offsets = [0, 8, 8], sizes = [4, 8, 8], strides = [1, 1, 1]} : vector<4x16x16xf32> to vector<4x8x8xf32>
    %c1 = arith.constant 1 : index
    %c0_21 = arith.constant 0 : index
    %c0_22 = arith.constant 0 : index
    %c0_23 = arith.constant 0 : index
    %70 = vector.load %arg7[%c1, %c0_21, %c0_22, %c0_23] : memref<2x4x8x8xf32, #tpu.memory_space<vmem>>, vector<1x4x8x8xf32>
    %71 = vector.shape_cast %70 : vector<1x4x8x8xf32> to vector<4x8x8xf32>
    %72 = vector.shape_cast %69 : vector<4x8x8xf32> to vector<1x4x8x8xf32>
    tpu.vector_store %arg7[%c1, %c0_21, %c0_22, %c0_23], %72 {strides = array<i32>} : memref<2x4x8x8xf32, #tpu.memory_space<vmem>>, vector<1x4x8x8xf32>,
    %73 = arith.truncf %64 : vector<4x16x16xf32> to vector<4x16x16xbf16>
    %cst_24 = arith.constant dense<0.000000e+00> : vector<4x8x16xf32>
    %74 = tpu.matmul %17, %73, %cst_24 {dimension_numbers = #tpu.dot_dimension_numbers<[2], [2], [1], [1], [0, 0, 0, 1, 1, 1], [0], [0]>} : vector<4x8x16xbf16>, vector<4x16x16xbf16>, vector<4x8x16xf32> -> vector<4x8x16xf32>
    %75 = vector.shape_cast %74 : vector<4x8x16xf32> to vector<32x16xf32>
    %76 = arith.truncf %75 : vector<32x16xf32> to vector<32x16xbf16>
    %77 = vector.extract_strided_slice %2 {offsets = [0, 96], sizes = [32, 32], strides = [1, 1]} : vector<32x128xbf16> to vector<32x32xbf16>
    %cst_25 = arith.constant dense<0.000000e+00> : vector<16x32xf32>
    %78 = tpu.matmul %76, %77, %cst_25 {dimension_numbers = #tpu.dot_dimension_numbers<[0], [0], [1], [1], [0, 1, 1, 1], [], []>} : vector<32x16xbf16>, vector<32x32xbf16>, vector<16x32xf32> -> vector<16x32xf32>
    %79 = vector.extract_strided_slice %1 {offsets = [1, 0], sizes = [1, 32], strides = [1, 1]} : vector<8x128xf32> to vector<1x32xf32>
    %80 = vector.shape_cast %79 : vector<1x32xf32> to vector<32xf32>
    %81 = vector.shape_cast %80 : vector<32xf32> to vector<1x32xf32>
    %82 = vector.broadcast %81 : vector<1x32xf32> to vector<16x32xf32>
    %83 = arith.addf %78, %82 : vector<16x32xf32>
    %84 = arith.addf %0, %83 : vector<16x32xf32>
    %cst_26 = arith.constant dense<0.000000e+00> : vector<16xf32>
    %85 = vector.multi_reduction <add>, %84, %cst_26 [1] : vector<16x32xf32> to vector<16xf32>
    %86 = vector.shape_cast %85 : vector<16xf32> to vector<16x1xf32>
    %cst_27 = arith.constant 3.200000e+01 : f32
    %87 = vector.broadcast %cst_27 : f32 to vector<16x1xf32>
    %88 = arith.divf %86, %87 : vector<16x1xf32>
    %89 = vector.broadcast %88 : vector<16x1xf32> to vector<16x32xf32>
    %90 = arith.subf %84, %89 : vector<16x32xf32>
    %91 = arith.mulf %90, %90 : vector<16x32xf32>
    %cst_28 = arith.constant dense<0.000000e+00> : vector<16xf32>
    %92 = vector.multi_reduction <add>, %91, %cst_28 [1] : vector<16x32xf32> to vector<16xf32>
    %93 = vector.shape_cast %92 : vector<16xf32> to vector<16x1xf32>
    %cst_29 = arith.constant 3.200000e+01 : f32
    %94 = vector.broadcast %cst_29 : f32 to vector<16x1xf32>
    %95 = arith.divf %93, %94 : vector<16x1xf32>
    %cst_30 = arith.constant 9.99999974E-6 : f32
    %96 = vector.broadcast %cst_30 : f32 to vector<16x1xf32>
    %97 = arith.addf %95, %96 : vector<16x1xf32>
    %98 = math.rsqrt %97 : vector<16x1xf32>
    %99 = vector.broadcast %98 : vector<16x1xf32> to vector<16x32xf32>
    %100 = arith.mulf %90, %99 : vector<16x32xf32>
    %101 = vector.extract_strided_slice %1 {offsets = [2, 0], sizes = [1, 32], strides = [1, 1]} : vector<8x128xf32> to vector<1x32xf32>
    %102 = vector.shape_cast %101 : vector<1x32xf32> to vector<32xf32>
    %103 = vector.shape_cast %102 : vector<32xf32> to vector<1x32xf32>
    %104 = vector.broadcast %103 : vector<1x32xf32> to vector<16x32xf32>
    %105 = arith.mulf %100, %104 : vector<16x32xf32>
    %106 = vector.extract_strided_slice %1 {offsets = [3, 0], sizes = [1, 32], strides = [1, 1]} : vector<8x128xf32> to vector<1x32xf32>
    %107 = vector.shape_cast %106 : vector<1x32xf32> to vector<32xf32>
    %108 = vector.shape_cast %107 : vector<32xf32> to vector<1x32xf32>
    %109 = vector.broadcast %108 : vector<1x32xf32> to vector<16x32xf32>
    %110 = arith.addf %105, %109 : vector<16x32xf32>
    %c0_31 = arith.constant 0 : index
    %c0_32 = arith.constant 0 : index
    %111 = vector.load %arg4[%c0_31, %c0_32] : memref<96x64xbf16, #tpu.memory_space<vmem>>, vector<96x64xbf16>
    %112 = arith.truncf %110 : vector<16x32xf32> to vector<16x32xbf16>
    %113 = vector.extract_strided_slice %111 {offsets = [0, 0], sizes = [32, 64], strides = [1, 1]} : vector<96x64xbf16> to vector<32x64xbf16>
    %cst_33 = arith.constant dense<0.000000e+00> : vector<16x64xf32>
    %114 = tpu.matmul %112, %113, %cst_33 {dimension_numbers = #tpu.dot_dimension_numbers<[1], [0], [0], [1], [0, 0, 1, 1], [], []>} : vector<16x32xbf16>, vector<32x64xbf16>, vector<16x64xf32> -> vector<16x64xf32>
    %115 = vector.extract_strided_slice %1 {offsets = [6, 0], sizes = [1, 64], strides = [1, 1]} : vector<8x128xf32> to vector<1x64xf32>
    %116 = vector.shape_cast %115 : vector<1x64xf32> to vector<64xf32>
    %117 = vector.shape_cast %116 : vector<64xf32> to vector<1x64xf32>
    %118 = vector.broadcast %117 : vector<1x64xf32> to vector<16x64xf32>
    %119 = arith.addf %114, %118 : vector<16x64xf32>
    %cst_34 = arith.constant 0.000000e+00 : f32
    %120 = vector.broadcast %cst_34 : f32 to vector<16x64xf32>
    %121 = arith.maximumf %119, %120 : vector<16x64xf32>
    %122 = arith.truncf %121 : vector<16x64xf32> to vector<16x64xbf16>
    %123 = vector.extract_strided_slice %111 {offsets = [32, 0], sizes = [64, 64], strides = [1, 1]} : vector<96x64xbf16> to vector<64x64xbf16>
    %cst_35 = arith.constant dense<0.000000e+00> : vector<16x64xf32>
    %124 = tpu.matmul %122, %123, %cst_35 {dimension_numbers = #tpu.dot_dimension_numbers<[1], [0], [0], [1], [0, 0, 1, 1], [], []>} : vector<16x64xbf16>, vector<64x64xbf16>, vector<16x64xf32> -> vector<16x64xf32>
    %125 = vector.extract_strided_slice %124 {offsets = [0, 0], sizes = [16, 32], strides = [1, 1]} : vector<16x64xf32> to vector<16x32xf32>
    %126 = vector.extract_strided_slice %1 {offsets = [7, 0], sizes = [1, 32], strides = [1, 1]} : vector<8x128xf32> to vector<1x32xf32>
    %127 = vector.shape_cast %126 : vector<1x32xf32> to vector<32xf32>
    %128 = vector.shape_cast %127 : vector<32xf32> to vector<1x32xf32>
    %129 = vector.broadcast %128 : vector<1x32xf32> to vector<16x32xf32>
    %130 = arith.addf %125, %129 : vector<16x32xf32>
    %131 = arith.addf %110, %130 : vector<16x32xf32>
    %cst_36 = arith.constant dense<0.000000e+00> : vector<16xf32>
    %132 = vector.multi_reduction <add>, %131, %cst_36 [1] : vector<16x32xf32> to vector<16xf32>
    %133 = vector.shape_cast %132 : vector<16xf32> to vector<16x1xf32>
    %cst_37 = arith.constant 3.200000e+01 : f32
    %134 = vector.broadcast %cst_37 : f32 to vector<16x1xf32>
    %135 = arith.divf %133, %134 : vector<16x1xf32>
    %136 = vector.broadcast %135 : vector<16x1xf32> to vector<16x32xf32>
    %137 = arith.subf %131, %136 : vector<16x32xf32>
    %138 = arith.mulf %137, %137 : vector<16x32xf32>
    %cst_38 = arith.constant dense<0.000000e+00> : vector<16xf32>
    %139 = vector.multi_reduction <add>, %138, %cst_38 [1] : vector<16x32xf32> to vector<16xf32>
    %140 = vector.shape_cast %139 : vector<16xf32> to vector<16x1xf32>
    %cst_39 = arith.constant 3.200000e+01 : f32
    %141 = vector.broadcast %cst_39 : f32 to vector<16x1xf32>
    %142 = arith.divf %140, %141 : vector<16x1xf32>
    %cst_40 = arith.constant 9.99999974E-6 : f32
    %143 = vector.broadcast %cst_40 : f32 to vector<16x1xf32>
    %144 = arith.addf %142, %143 : vector<16x1xf32>
    %145 = math.rsqrt %144 : vector<16x1xf32>
    %146 = vector.broadcast %145 : vector<16x1xf32> to vector<16x32xf32>
    %147 = arith.mulf %137, %146 : vector<16x32xf32>
    %148 = vector.extract_strided_slice %1 {offsets = [4, 0], sizes = [1, 32], strides = [1, 1]} : vector<8x128xf32> to vector<1x32xf32>
    %149 = vector.shape_cast %148 : vector<1x32xf32> to vector<32xf32>
    %150 = vector.shape_cast %149 : vector<32xf32> to vector<1x32xf32>
    %151 = vector.broadcast %150 : vector<1x32xf32> to vector<16x32xf32>
    %152 = arith.mulf %147, %151 : vector<16x32xf32>
    %153 = vector.extract_strided_slice %1 {offsets = [5, 0], sizes = [1, 32], strides = [1, 1]} : vector<8x128xf32> to vector<1x32xf32>
    %154 = vector.shape_cast %153 : vector<1x32xf32> to vector<32xf32>
    %155 = vector.shape_cast %154 : vector<32xf32> to vector<1x32xf32>
    %156 = vector.broadcast %155 : vector<1x32xf32> to vector<16x32xf32>
    %157 = arith.addf %152, %156 : vector<16x32xf32>
    %c0_41 = arith.constant 0 : index
    %c0_42 = arith.constant 0 : index
    %158 = vector.load %arg6[%c0_41, %c0_42] : memref<16x32xf32, #tpu.memory_space<vmem>>, vector<16x32xf32>
    tpu.vector_store %arg6[%c0_41, %c0_42], %157 {strides = array<i32>} : memref<16x32xf32, #tpu.memory_space<vmem>>, vector<16x32xf32>,
    return
  }
  func.func @transform_0(%arg0: i32) -> (i32, i32) {
    %c0_i32 = arith.constant 0 : i32
    %c0_i32_0 = arith.constant 0 : i32
    %c0_i32_1 = arith.constant 0 : i32
    return %c0_i32, %c0_i32_0 : i32, i32
  }
  func.func @transform_1(%arg0: i32) -> (i32, i32, i32, i32) {
    %c0_i32 = arith.constant 0 : i32
    %c0_i32_0 = arith.constant 0 : i32
    %c0_i32_1 = arith.constant 0 : i32
    %c0_i32_2 = arith.constant 0 : i32
    %c0_i32_3 = arith.constant 0 : i32
    return %c0_i32, %c0_i32_0, %c0_i32_1, %c0_i32_2 : i32, i32, i32, i32
  }
  func.func @transform_2(%arg0: i32) -> (i32, i32) {
    %c0_i32 = arith.constant 0 : i32
    %c0_i32_0 = arith.constant 0 : i32
    %c0_i32_1 = arith.constant 0 : i32
    return %c0_i32, %c0_i32_0 : i32, i32
  }
  func.func @transform_3(%arg0: i32) -> (i32, i32) {
    %c0_i32 = arith.constant 0 : i32
    %c0_i32_0 = arith.constant 0 : i32
    %c0_i32_1 = arith.constant 0 : i32
    return %c0_i32, %c0_i32_0 : i32, i32
  }
  func.func @transform_4(%arg0: i32) -> (i32, i32) {
    %c0_i32 = arith.constant 0 : i32
    %c0_i32_0 = arith.constant 0 : i32
    %c0_i32_1 = arith.constant 0 : i32
    return %c0_i32, %c0_i32_0 : i32, i32
  }
  func.func @transform_5(%arg0: i32) -> (i32, i32) {
    %c0_i32 = arith.constant 0 : i32
    %c0_i32_0 = arith.constant 0 : i32
    %c0_i32_1 = arith.constant 0 : i32
    return %c0_i32, %c0_i32_0 : i32, i32
  }
  func.func @transform_6(%arg0: i32) -> (i32, i32, i32, i32) {
    %c0_i32 = arith.constant 0 : i32
    %c0_i32_0 = arith.constant 0 : i32
    %c0_i32_1 = arith.constant 0 : i32
    %c0_i32_2 = arith.constant 0 : i32
    %c0_i32_3 = arith.constant 0 : i32
    return %c0_i32, %c0_i32_0, %c0_i32_1, %c0_i32_2 : i32, i32, i32, i32
  }
}

</mosaic_0001>

<bundles_post_ra>
// kernel: encoder_layer.1
= control target key start
LH: loop header
LB: loop body
LE: loop exit
PB: predicated region body
PF: predicated region fallthrough
CT: control target
= control target key end

     0   :  { %12 = vsyncpa [#allocation3], 0  ;;  %v1357_v1 = vmov 0.0   ;;  %vm1358_vm0 = vmmov 0   ;;  %vm49_vm1 = vcmask 261120   ;;  %s1652_s0 = inlined_call_operand.vmem [shape: f32[16,32], index: 0, kind: input, shape index: {}]   ;;  %s1653_s1 = inlined_call_operand.vmem [shape: f32[2,2,8,8], index: 1, kind: input, shape index: {}]   ;;  %s1654_s2 = inlined_call_operand.vmem [shape: bf16[32,128], index: 2, kind: input, shape index: {}]   ;;  %s1655_s3 = inlined_call_operand.vmem [shape: bf16[96,64], index: 3, kind: input, shape index: {}]   ;;  %s1656_s4 = inlined_call_operand.vmem [shape: f32[8,128], index: 4, kind: input, shape index: {}]   ;;  %s1657_s5 = inlined_call_operand.hbm [shape: f32[16,32], index: 5, kind: output, shape index: {0}]   ;;  %s1658_s6 = inlined_call_operand.hbm [shape: f32[2,4,8,8], index: 6, kind: output, shape index: {1}]  }
   0x1   :  { %v1403_v0 = vld [vmem:[%s1654_s2] sm:$0xff]   ;;  %1168 = vmatprep.subr.bf16.mxu0 %v1357_v1  ;;  %v1409_v2 = vld [vmem:[%s1654_s2 + $0x8] sm:$0xff]   ;;  %1176 = vmatprep.subr.bf16.mxu1 %v1357_v1 }
   0x2   :  { %1169 = vmatpush3.bf16.msra.mxu0 %v1403_v0  ;;  %1172 = vmatprep.mubr.msk.bf16.mxu0 %vm1358_vm0, %v1357_v1  ;;  %v1418_v3 = vld [vmem:[%s1652_s0] sm:$0xff]  ;;  %v1423_v4 = vld [vmem:[%s1652_s0 + $0x8] sm:$0xff] }
   0x3   :  { %1170 = vmatprep.subr.bf16.mxu0 %v1357_v1  ;;  %1178 = vmatprep.mubr.msk.bf16.mxu1 %vm1358_vm0, %v1357_v1  ;;  %v32_v5 = vpack.c.bf16 %v1423_v4, %v1418_v3 }
   0x6   :  { %1171 = vmatpush3.bf16.msra.mxu0 %v1409_v2 }
   0x7   :  { %13 = vsyncpa [#allocation5], 0  ;;  %1200 = vmatprep.subr.bf16.mxu0 %v1357_v1  ;;  %v33_v6 = vlaneseq  ;;  %v1441_v9 = vld [vmem:[%s1656_s4] sm:$0xff]  ;;  %v167_v23 = vld [vmem:[%s1653_s1 + $0x8] sm:$0xff]  ;;  %vm208_vm3 = vcmask 1043456   ;;  %s1359_s8 = smov 8  }
   0x8   :  { %v169_v26 = vld [vmem:[%s1653_s1 + $0x18] sm:$0xff]  ;;  %vm171_vm2 = vcmp.gt.f32.partialorder %v167_v23, 0.0  ;;  %vm174_vm4 = vcmask 64512   ;;  %v166_v48 = vld [vmem:[%s1653_s1] sm:$0xff]  ;;  %v168_v50 = vld [vmem:[%s1653_s1 + $0x10] sm:$0xff]  ;;  %vm454_vm7 = vcmask 130048  }
   0x9   :  { %1173 = vmatmul.mubr.msk.bf16.vlgmr.msra.gmra.mrb[0].mxu0 %vm49_vm1, %v32_v5  ;;  %v1435_v7 = vshrl.u32 %v33_v6, 7  ;;  %v173_v28 = vsel %vm171_vm2, %v169_v26, -1e+10  ;;  %vm170_vm5 = vcmp.gt.f32.partialorder %v166_v48, 0.0  ;;  %v181_v53 = vsel %vm174_vm4, %v166_v48, 0.0  ;;  %s1360_s1 = smov 32  }
   0xa   :  { %1202 = vmatprep.mubr.msk.bf16.mxu0 %vm1358_vm0, %v1357_v1  ;;  %v172_v51 = vsel %vm170_vm5, %v168_v50, -1e+10  ;;  %vm187_vm6 = vcmp.gt.f32.partialorder %v181_v53, 0.0  ;;  %vm969_vm9 = vcmask 523264   ;;  %s1362_s25 = smov [#allocation4]  }
   0xb   :  { %v35_v8 = vsub.s32 0, %v1435_v7  ;;  %v175_v54 = vsel %vm174_vm4, %v172_v51, -2e+10  ;;  %s1079_s26 = sshll.u32 %s1362_s25, 4  ;;  %s1080_s26 = int_to_ptr.vmem [resolvable:$true] %s1079_s26 }
   0xc   :  { %s1309_s27 = scalar_lea.vmem %s1080_s26, 1024  ;;  %p1314_p1 = scmp.lt.s32.totalorder %s1080_s26, %s1080_s26 }
   0xd   :  { %v36_v10 = vrot.slane %v1441_v9, %v35_v8  ;;  %p1310_p0 = scmp.ne.s32.totalorder %s1080_s26, %s1309_s27  ;;  %p1315_p2 = scmp.lt.s32.totalorder %s1309_s27, %s1309_s27 }
   0xf   :  { %p1316_p3 = por %p1315_p2, %p1314_p1 }
  0x11   :  { %p1317_p4 = pnand %p1316_p3, %p1310_p0 }
  0xdc   :  { %v87_v11 = vpop.f32.mrb[0].mxu0 }
  0xdd   :  { %v1174_v12 = vpop.f32.mrb[1].mxu0  ;;  %v88_v13 = vadd.f32 %v87_v11, %v36_v10 }
  0xde   :  { %v90_v14 = vpop.f32.mrb[2].mxu0 }
  0xdf   :  { %94 = vxpose.xlu0.b32.start [1/2] (short) (narrow) %v88_v13, 96  ;;  %v1175_v15 = vpop.f32.mrb[3].mxu0  ;;  %v91_v16 = vadd.f32 %v90_v14, %v36_v10 }
  0xe3   :  { %95 = vxpose.xlu0.b32.end [2/2] (short) (narrow) %v91_v16, 96 }
 0x15f   :  { %v110_v17 = vpop.trf.xlu0 }
 0x160   :  { %v1126_v18 = vpack.c.bf16 %v110_v17, %v110_v17 }
 0x162   :  { %189 = vxpose.xlu1.c.b16.start.end [1/1] (short) (narrow) %v1126_v18, 16 }
 0x163   :  { %v111_v19 = vpop.trf.xlu0 }
 0x164   :  { %v1127_v20 = vpack.c.bf16 %v111_v19, %v111_v19 }
 0x166   :  { %253 = vxpose.xlu1.c.b16.start.end [1/1] (short) (narrow) %v1127_v20, 16 }
 0x167   :  { %v112_v21 = vpop.trf.xlu0 }
 0x168   :  { %v1128_v22 = vpack.c.bf16 %v112_v21, %v112_v21 }
 0x16a   :  { %316 = vxpose.xlu0.c.b16.start.end [1/1] (short) (narrow) %v1128_v22, 16 }
 0x16b   :  { %v113_v24 = vpop.trf.xlu0 }
 0x16c   :  { %v1129_v25 = vpack.c.bf16 %v113_v24, %v113_v24 }
 0x16e   :  { %379 = vxpose.xlu1.c.b16.start.end [1/1] (short) (narrow) %v1129_v25, 16 }
 0x16f   :  { %v114_v27 = vpop.trf.xlu0 }
 0x170   :  { %v1130_v29 = vpack.c.bf16 %v114_v27, %v114_v27 }
 0x172   :  { %v210_v30 = vsel %vm208_vm3, %v1130_v29, 0  ;;  %177 = vrot.lane.b32.xlu1 %v173_v28, %s1359_s8 }
 0x173   :  { %1177 = vmatpush3.bf16.msra.mxu1 %v210_v30  ;;  %v115_v31 = vpop.trf.xlu0 }
 0x174   :  { %1182 = vmatprep.subr.bf16.mxu1 %v1357_v1  ;;  %v1131_v36 = vpack.c.bf16 %v115_v31, %v115_v31 }
 0x176   :  { %183 = vrot.lane.b32.xlu1 %v167_v23, %s1359_s8  ;;  %v273_v38 = vsel %vm208_vm3, %v1131_v36, 0 }
 0x177   :  { %v116_v32 = vpop.trf.xlu0 }
 0x178   :  { %v1132_v40 = vpack.c.bf16 %v116_v32, %v116_v32 }
 0x17a   :  { %v336_v43 = vsel %vm208_vm3, %v1132_v40, 0 }
 0x17b   :  { %v117_v33 = vpop.trf.xlu0 }
 0x17c   :  { %v1133_v44 = vpack.c.bf16 %v117_v33, %v117_v33 }
 0x17e   :  { %v399_v46 = vsel %vm208_vm3, %v1133_v44, 0 }
 0x17f   :  { %v1454_v34 = vpop.trf.xlu0 }
 0x183   :  { %v1456_v35 = vpop.trf.xlu0 }
 0x187   :  { %v1462_v39 = vpop.trf.xlu0 }
 0x18b   :  { %v1465_v42 = vpop.trf.xlu0 }
 0x1c8   :  { %v197_v37 = vpop.trf.xlu1 }
 0x1c9   :  { %1179 = vmatmul.mubr.msk.bf16.vlgmr.msra.gmra.mrb[0].mxu1 %vm174_vm4, %v197_v37 }
 0x1ca   :  { %1183 = vmatpush3.bf16.msra.mxu1 %v273_v38  ;;  %1184 = vmatprep.mubr.msk.bf16.mxu1 %vm1358_vm0, %v1357_v1 }
 0x1cb   :  { %1188 = vmatprep.subr.bf16.mxu1 %v1357_v1 }
 0x1cc   :  { %v261_v41 = vpop.trf.xlu1 }
 0x1d0   :  { %v324_v45 = vpop.trf.xlu0 }
 0x1d1   :  { %1185 = vmatmul.mubr.msk.bf16.vlgmr.msra.gmra.mrb[4].mxu1 %vm174_vm4, %v261_v41 }
 0x1d2   :  { %1189 = vmatpush3.bf16.msra.mxu1 %v336_v43  ;;  %1190 = vmatprep.mubr.msk.bf16.mxu1 %vm1358_vm0, %v1357_v1 }
 0x1d3   :  { %1194 = vmatprep.subr.bf16.mxu1 %v1357_v1 }
 0x1d4   :  { %v387_v47 = vpop.trf.xlu1 }
 0x1d9   :  { %1191 = vmatmul.mubr.msk.bf16.vlgmr.msra.gmra.mrb[8].mxu1 %vm174_vm4, %v324_v45 }
 0x1da   :  { %1195 = vmatpush3.bf16.msra.mxu1 %v399_v46  ;;  %1196 = vmatprep.mubr.msk.bf16.mxu1 %vm1358_vm0, %v1357_v1 }
 0x1db   :  { %1206 = vmatprep.subr.bf16.mxu1 %v1357_v1 }
 0x1e1   :  { %1197 = vmatmul.mubr.msk.bf16.vlgmr.msra.gmra.mrb[12].mxu1 %vm174_vm4, %v387_v47 }
 0x1e2   :  { %1208 = vmatprep.mubr.msk.bf16.mxu1 %vm1358_vm0, %v1357_v1 }
 0x1e4   :  { %v178_v49 = vpop.permute.xlu1 %177 }
 0x1e5   :  { %v180_v56 = vsel %vm174_vm4, -2e+10, %v178_v49 }
 0x1e8   :  { %v184_v52 = vpop.permute.xlu1 %183 }
 0x1e9   :  { %v186_v55 = vsel %vm174_vm4, 0.0, %v184_v52 }
 0x1ea   :  { %vm188_vm8 = vcmp.gt.f32.partialorder %v186_v55, 0.0 }
 0x29c   :  { %v246_v57 = vpop.f32.mrb[0].mxu1 }
 0x29d   :  { %v247_v58 = vadd.f32 %v246_v57, %v175_v54  ;;  %v1180_v59 = vpop.f32.mrb[1].mxu1 }
 0x29e   :  { %v249_v60 = vpop.f32.mrb[2].mxu1 }
 0x29f   :  { %v250_v61 = vadd.f32 %v249_v60, %v180_v56  ;;  %v1181_v62 = vpop.f32.mrb[3].mxu1  ;;  %v446_v63 = vsel %vm187_vm6, %v247_v58, %v175_v54 }
 0x2a0   :  { %v455_v5 = vsel %vm454_vm7, %v446_v63, -inf }
 0x2a1   :  { %456 = vmax.xlane.f32.xlu1 %v455_v5  ;;  %v447_v6 = vsel %vm188_vm8, %v250_v61, %v180_v56 }
 0x2a2   :  { %v458_v10 = vsel %vm454_vm7, %v447_v6, -inf }
 0x2a4   :  { %v309_v8 = vpop.f32.mrb[4].mxu1 }
 0x2a5   :  { %v310_v11 = vadd.f32 %v309_v8, %v175_v54  ;;  %459 = vmax.xlane.f32.xlu1 %v458_v10  ;;  %v1186_v12 = vpop.f32.mrb[5].mxu1 }
 0x2a6   :  { %v312_v13 = vpop.f32.mrb[6].mxu1 }
 0x2a7   :  { %v313_v14 = vadd.f32 %v312_v13, %v180_v56  ;;  %v1187_v15 = vpop.f32.mrb[7].mxu1  ;;  %v448_v16 = vsel %vm187_vm6, %v310_v11, %v175_v54 }
 0x2a8   :  { %v461_v17 = vsel %vm454_vm7, %v448_v16, -inf }
 0x2a9   :  { %462 = vmax.xlane.f32.xlu1 %v461_v17  ;;  %v449_v18 = vsel %vm188_vm8, %v313_v14, %v180_v56 }
 0x2aa   :  { %v464_v20 = vsel %vm454_vm7, %v449_v18, -inf }
 0x2ac   :  { %v372_v19 = vpop.f32.mrb[8].mxu1 }
 0x2ad   :  { %v373_v21 = vadd.f32 %v372_v19, %v175_v54  ;;  %465 = vmax.xlane.f32.xlu1 %v464_v20  ;;  %v1192_v22 = vpop.f32.mrb[9].mxu1 }
 0x2ae   :  { %v375_v23 = vpop.f32.mrb[10].mxu1 }
 0x2af   :  { %v376_v24 = vadd.f32 %v375_v23, %v180_v56  ;;  %v1193_v25 = vpop.f32.mrb[11].mxu1  ;;  %v450_v26 = vsel %vm187_vm6, %v373_v21, %v175_v54 }
 0x2b0   :  { %v467_v27 = vsel %vm454_vm7, %v450_v26, -inf }
 0x2b1   :  { %468 = vmax.xlane.f32.xlu1 %v467_v27  ;;  %v451_v28 = vsel %vm188_vm8, %v376_v24, %v180_v56 }
 0x2b2   :  { %v470_v30 = vsel %vm454_vm7, %v451_v28, -inf }
 0x2b4   :  { %v435_v29 = vpop.f32.mrb[12].mxu1 }
 0x2b5   :  { %v436_v31 = vadd.f32 %v435_v29, %v175_v54  ;;  %471 = vmax.xlane.f32.xlu1 %v470_v30  ;;  %v1198_v32 = vpop.f32.mrb[13].mxu1 }
 0x2b6   :  { %v438_v33 = vpop.f32.mrb[14].mxu1 }
 0x2b7   :  { %v439_v36 = vadd.f32 %v438_v33, %v180_v56  ;;  %v1199_v37 = vpop.f32.mrb[15].mxu1  ;;  %v452_v38 = vsel %vm187_vm6, %v436_v31, %v175_v54 }
 0x2b8   :  { %v473_v40 = vsel %vm454_vm7, %v452_v38, -inf }
 0x2b9   :  { %474 = vmax.xlane.f32.xlu1 %v473_v40  ;;  %v453_v41 = vsel %vm188_vm8, %v439_v36, %v180_v56 }
 0x2ba   :  { %v476_v43 = vsel %vm454_vm7, %v453_v41, -inf }
 0x2bd   :  { %477 = vmax.xlane.f32.xlu1 %v476_v43 }
 0x32e   :  { %v457_v44 = vpop.xlane.xlu1 %456 }
 0x32f   :  { %v479_v45 = vsub.f32 %v446_v63, %v457_v44 }
 0x331   :  { %v487_v46 = vmul.f32 1.442695, %v479_v45 }
 0x332   :  { %v460_v47 = vpop.xlane.xlu1 %459 }
 0x333   :  { %1269 = vpow2.f32 %v487_v46  ;;  %v480_v48 = vsub.f32 %v447_v6, %v460_v47  ;;  %v1134_v46 = vpack.c.bf16 %v1454_v34, %v1454_v34 }
 0x335   :  { %v489_v49 = vmul.f32 1.442695, %v480_v48 }
 0x336   :  { %v463_v50 = vpop.xlane.xlu1 %462 }
 0x337   :  { %1271 = vpow2.f32 %v489_v49  ;;  %v481_v51 = vsub.f32 %v448_v16, %v463_v50 }
 0x339   :  { %v491_v52 = vmul.f32 1.442695, %v481_v51 }
 0x33a   :  { %v466_v53 = vpop.xlane.xlu1 %465 }
 0x33b   :  { %1273 = vpow2.f32 %v491_v52  ;;  %v482_v54 = vsub.f32 %v449_v18, %v466_v53  ;;  %v1135_v53 = vpack.c.bf16 %v1456_v35, %v1456_v35  ;;  %v1136_v35 = vpack.c.bf16 %v1462_v39, %v1462_v39 }
 0x33d   :  { %v1270_v57 = vpop.eup %1269  ;;  %v493_v55 = vmul.f32 1.442695, %v482_v54 }
 0x33e   :  { %v469_v56 = vpop.xlane.xlu1 %468  ;;  %v503_v58 = vsel %vm454_vm7, %v1270_v57, 0.0 }
 0x33f   :  { %1275 = vpow2.f32 %v493_v55  ;;  %v483_v59 = vsub.f32 %v450_v26, %v469_v56  ;;  %504 = vadd.xlane.f32.xlu0 %v503_v58 }
 0x341   :  { %v1272_v60 = vpop.eup %1271  ;;  %v495_v61 = vmul.f32 1.442695, %v483_v59 }
 0x342   :  { %v472_v62 = vpop.xlane.xlu1 %471  ;;  %v506_v63 = vsel %vm454_vm7, %v1272_v60, 0.0 }
 0x343   :  { %1277 = vpow2.f32 %v495_v61  ;;  %v484_v5 = vsub.f32 %v451_v28, %v472_v62  ;;  %507 = vadd.xlane.f32.xlu1 %v506_v63  ;;  %v1137_v62 = vpack.c.bf16 %v1465_v42, %v1465_v42 }
 0x345   :  { %v1274_v6 = vpop.eup %1273  ;;  %v497_v8 = vmul.f32 1.442695, %v484_v5 }
 0x346   :  { %v475_v10 = vpop.xlane.xlu1 %474  ;;  %v509_v11 = vsel %vm454_vm7, %v1274_v6, 0.0 }
 0x347   :  { %1279 = vpow2.f32 %v497_v8  ;;  %v485_v12 = vsub.f32 %v452_v38, %v475_v10  ;;  %510 = vadd.xlane.f32.xlu1 %v509_v11 }
 0x349   :  { %v1276_v13 = vpop.eup %1275  ;;  %v499_v14 = vmul.f32 1.442695, %v485_v12 }
 0x34a   :  { %v478_v15 = vpop.xlane.xlu1 %477  ;;  %v512_v16 = vsel %vm454_vm7, %v1276_v13, 0.0 }
 0x34b   :  { %1281 = vpow2.f32 %v499_v14  ;;  %v486_v17 = vsub.f32 %v453_v41, %v478_v15  ;;  %513 = vadd.xlane.f32.xlu1 %v512_v16 }
 0x34d   :  { %v1278_v18 = vpop.eup %1277  ;;  %v501_v19 = vmul.f32 1.442695, %v486_v17 }
 0x34e   :  { %v515_v20 = vsel %vm454_vm7, %v1278_v18, 0.0 }
 0x34f   :  { %1283 = vpow2.f32 %v501_v19  ;;  %516 = vadd.xlane.f32.xlu1 %v515_v20 }
 0x351   :  { %v1280_v21 = vpop.eup %1279 }
 0x352   :  { %v518_v22 = vsel %vm454_vm7, %v1280_v21, 0.0 }
 0x353   :  { %519 = vadd.xlane.f32.xlu0 %v518_v22 }
 0x355   :  { %v1282_v23 = vpop.eup %1281 }
 0x356   :  { %v521_v24 = vsel %vm454_vm7, %v1282_v23, 0.0 }
 0x357   :  { %522 = vadd.xlane.f32.xlu1 %v521_v24 }
 0x359   :  { %v1284_v25 = vpop.eup %1283 }
 0x35a   :  { %v524_v26 = vsel %vm454_vm7, %v1284_v25, 0.0 }
 0x35b   :  { %525 = vadd.xlane.f32.xlu0 %v524_v26 }
 0x368   :  { %778 = vrot.lane.b32.xlu1 %v1403_v0, %s1360_s1 }
 0x371   :  { %780 = vrot.lane.b32.xlu0 %v1409_v2, %s1360_s1 }
 0x3cc   :  { %v505_v27 = vpop.xlane.xlu0 %504 }
 0x3cd   :  { %1285 = vrcp.f32 %v505_v27 }
 0x3d0   :  { %v508_v28 = vpop.xlane.xlu1 %507 }
 0x3d1   :  { %1287 = vrcp.f32 %v508_v28 }
 0x3d4   :  { %v511_v29 = vpop.xlane.xlu1 %510 }
 0x3d5   :  { %1289 = vrcp.f32 %v511_v29 }
 0x3d7   :  { %v1286_v30 = vpop.eup %1285 }
 0x3d8   :  { %v514_v31 = vpop.xlane.xlu1 %513  ;;  %v528_v32 = vmul.f32 %v1286_v30, %v1270_v57 }
 0x3d9   :  { %1291 = vrcp.f32 %v514_v31 }
 0x3da   :  { %543 = vst.msk [vmem:[#allocation4] sm:$0xff] %vm174_vm4, %v528_v32 }
 0x3db   :  { %v1288_v33 = vpop.eup %1287 }
 0x3dc   :  { %v517_v36 = vpop.xlane.xlu1 %516  ;;  %v1517_v37 = vmul.f32 %v1288_v33, %v1272_v60 }
 0x3dd   :  { %1293 = vrcp.f32 %v517_v36 }
 0x3de   :  { %v568_v0 = vpack.c.bf16 %v1517_v37, %v528_v32 }
 0x3df   :  { %v1290_v2 = vpop.eup %1289 }
 0x3e0   :  { %v520_v38 = vpop.xlane.xlu0 %519  ;;  %v576_v40 = vsel %vm454_vm7, %v568_v0, 0  ;;  %v532_v41 = vmul.f32 %v1290_v2, %v1274_v6 }
 0x3e1   :  { %1295 = vrcp.f32 %v520_v38  ;;  %1201 = vmatpush3.bf16.xpose.msra.mxu0 %v576_v40 }
 0x3e2   :  { %544 = vst.msk [vmem:[#allocation4 + $0x8] sm:$0xff] %vm174_vm4, %v532_v41  ;;  %1212 = vmatprep.subr.bf16.mxu0 %v1357_v1 }
 0x3e3   :  { %v1292_v43 = vpop.eup %1291 }
 0x3e4   :  { %v523_v44 = vpop.xlane.xlu1 %522  ;;  %v1523_v45 = vmul.f32 %v1292_v43, %v1276_v13 }
 0x3e5   :  { %1297 = vrcp.f32 %v523_v44 }
 0x3e6   :  { %v569_v47 = vpack.c.bf16 %v1523_v45, %v532_v41 }
 0x3e7   :  { %v1294_v48 = vpop.eup %1293 }
 0x3e8   :  { %1203 = vmatmul.mubr.msk.bf16.vlgmr.msra.gmra.mrb[4].mxu0 %vm454_vm7, %v1134_v46  ;;  %v526_v49 = vpop.xlane.xlu0 %525  ;;  %v622_v50 = vsel %vm454_vm7, %v569_v47, 0  ;;  %v536_v51 = vmul.f32 %v1294_v48, %v1278_v18  ;;  %v779_v39 = vpop.permute.xlu1 %778 }
 0x3e9   :  { %1299 = vrcp.f32 %v526_v49  ;;  %1207 = vmatpush3.bf16.xpose.msra.mxu1 %v622_v50  ;;  %1214 = vmatprep.mubr.msk.bf16.mxu0 %vm1358_vm0, %v1357_v1  ;;  %v1264_v50 = vld [vmem:[%s1655_s3 + $0x8] sm:$0xff]  }
 0x3ea   :  { %545 = vst.msk [vmem:[#allocation4 + $0x10] sm:$0xff] %vm174_vm4, %v536_v51  ;;  %1218 = vmatprep.subr.bf16.mxu1 %v1357_v1 }
 0x3eb   :  { %v1296_v52 = vpop.eup %1295 }
 0x3ec   :  { %v1534_v34 = vmul.f32 %v1296_v52, %v1280_v21  ;;  %v781_v63 = vpop.permute.xlu0 %780  ;;  %v1266_v52 = vld [vmem:[%s1655_s3 + $0x18] sm:$0xff]  }
 0x3ee   :  { %v570_v54 = vpack.c.bf16 %v1534_v34, %v536_v51  ;;  %v1265_v51 = vld [vmem:[%s1655_s3 + $0x10] sm:$0xff]  }
 0x3ef   :  { %v1298_v57 = vpop.eup %1297 }
 0x3f0   :  { %1209 = vmatmul.mubr.msk.bf16.vlgmr.msra.gmra.mrb[16].mxu1 %vm454_vm7, %v1135_v53  ;;  %v668_v55 = vsel %vm454_vm7, %v570_v54, 0  ;;  %v540_v56 = vmul.f32 %v1298_v57, %v1282_v23 }
 0x3f1   :  { %1213 = vmatpush3.bf16.xpose.msra.mxu0 %v668_v55  ;;  %1220 = vmatprep.mubr.msk.bf16.mxu1 %vm1358_vm0, %v1357_v1 }
 0x3f2   :  { %546 = vst.msk [vmem:[#allocation4 + $0x18] sm:$0xff] %vm174_vm4, %v540_v56  ;;  %1224 = vmatprep.subr.bf16.mxu0 %v1357_v1 }
 0x3f3   :  { %v1300_v58 = vpop.eup %1299 }
 0x3f4   :  { %v1545_v59 = vmul.f32 %v1300_v58, %v1284_v25  ;;  %v760_v25 = vsub.s32 1, %v1435_v7 }
 0x3f6   :  { %v571_v60 = vpack.c.bf16 %v1545_v59, %v540_v56  ;;  %v761_v26 = vrot.slane %v1441_v9, %v760_v25 }
 0x3f8   :  { %1215 = vmatmul.mubr.msk.bf16.vlgmr.msra.gmra.mrb[8].mxu0 %vm454_vm7, %v1136_v35  ;;  %v714_v61 = vsel %vm454_vm7, %v571_v60, 0  ;;  %v859_v35 = vsub.s32 2, %v1435_v7 }
 0x3f9   :  { %1219 = vmatpush3.bf16.xpose.msra.mxu1 %v714_v61  ;;  %1228 = vmatprep.mubr.msk.bf16.mxu0 %vm1358_vm0, %v1357_v1 }
 0x3fa   :  { %1232 = vmatprep.subr.bf16.mxu1 %v1357_v1  ;;  %1225 = vmatpush3.bf16.msra.mxu0 %v779_v39  ;;  %v860_v61 = vrot.slane %v1441_v9, %v859_v35  ;;  %v865_v39 = vsub.s32 3, %v1435_v7 }
 0x3fb   :  { %1226 = vmatprep.subr.bf16.mxu0 %v1357_v1 }
 0x3fe   :  { %1227 = vmatpush3.bf16.msra.mxu0 %v781_v63 }
 0x3ff   :  { %1240 = vmatprep.subr.bf16.mxu0 %v1357_v1 }
 0x400   :  { %1221 = vmatmul.mubr.msk.bf16.vlgmr.msra.gmra.mrb[20].mxu1 %vm454_vm7, %v1137_v62 }
 0x401   :  { %1236 = vmatprep.mubr.msk.bf16.mxu1 %vm1358_vm0, %v1357_v1 }
 0x4bb   :  { %v612_v5 = vpop.f32.mrb[4].mxu0 }
 0x4bc   :  { %v1204_v6 = vpop.f32.mrb[5].mxu0 }
 0x4bd   :  { %v615_v8 = vpop.f32.mrb[6].mxu0 }
 0x4be   :  { %v1205_v10 = vpop.f32.mrb[7].mxu0  ;;  %v866_v8 = vrot.slane %v1441_v9, %v865_v39 }
 0x4c3   :  { %v658_v11 = vpop.f32.mrb[16].mxu1 }
 0x4c4   :  { %v756_v12 = vpack.c.bf16 %v658_v11, %v612_v5  ;;  %v1210_v42 = vpop.f32.mrb[17].mxu1 }
 0x4c5   :  { %v661_v13 = vpop.f32.mrb[18].mxu1 }
 0x4c6   :  { %v1211_v14 = vpop.f32.mrb[19].mxu1  ;;  %762 = vxpose.xlu1.c.b16.start [1/2] (short) (narrow) %v756_v12, 16  ;;  %v1267_v13 = vld [vmem:[%s1655_s3 + $0x20] sm:$0xff]  }
 0x4c7   :  { %v1268_v14 = vld [vmem:[%s1655_s3 + $0x28] sm:$0xff]  }
 0x4cb   :  { %v704_v15 = vpop.f32.mrb[8].mxu0 }
 0x4cc   :  { %v1216_v16 = vpop.f32.mrb[9].mxu0 }
 0x4cd   :  { %v707_v17 = vpop.f32.mrb[10].mxu0 }
 0x4ce   :  { %v1217_v18 = vpop.f32.mrb[11].mxu0 }
 0x4d3   :  { %v750_v19 = vpop.f32.mrb[20].mxu1 }
 0x4d4   :  { %v757_v20 = vpack.c.bf16 %v750_v19, %v704_v15  ;;  %v1222_v21 = vpop.f32.mrb[21].mxu1  ;;  %v884_v15 = vsub.s32 6, %v1435_v7 }
 0x4d5   :  { %v753_v22 = vpop.f32.mrb[22].mxu1 }
 0x4d6   :  { %v1223_v23 = vpop.f32.mrb[23].mxu1  ;;  %763 = vxpose.xlu1.c.b16.end [2/2] (short) (narrow) %v757_v20, 16  ;;  %v885_v16 = vrot.slane %v1441_v9, %v884_v15 }
 0x538   :  { %v770_v24 = vpop.trf.xlu1 }
 0x539   :  { %1229 = vmatmul.mubr.msk.bf16.vlgmr.msra.gmra.mrb[12].mxu0 %vm49_vm1, %v770_v24 }
 0x53a   :  { %1248 = vmatprep.mubr.msk.bf16.mxu0 %vm1358_vm0, %v1357_v1  ;;  %1241 = vmatpush3.bf16.msra.mxu0 %v1265_v51 }
 0x53b   :  { %1242 = vmatprep.subr.bf16.mxu0 %v1357_v1 }
 0x53e   :  { %1243 = vmatpush3.bf16.msra.mxu0 %v1266_v52 }
 0x53f   :  { %1244 = vmatprep.subr.bf16.mxu0 %v1357_v1 }
 0x542   :  { %1245 = vmatpush3.bf16.msra.mxu0 %v1267_v13 }
 0x543   :  { %1246 = vmatprep.subr.bf16.mxu0 %v1357_v1 }
 0x546   :  { %1247 = vmatpush3.bf16.msra.mxu0 %v1268_v14 }
 0x60c   :  { %v821_v27 = vpop.f32.mrb[12].mxu0 }
 0x60d   :  { %v822_v28 = vadd.f32 %v821_v27, %v761_v26  ;;  %v1230_v29 = vpop.f32.mrb[13].mxu0 }
 0x60e   :  { %v824_v30 = vpop.f32.mrb[14].mxu0 }
 0x60f   :  { %v825_v31 = vadd.f32 %v824_v30, %v761_v26  ;;  %v1231_v32 = vpop.f32.mrb[15].mxu0  ;;  %v828_v33 = vadd.f32 %v822_v28, %v1418_v3 }
 0x611   :  { %v830_v36 = vsel %vm49_vm1, %v828_v33, 0.0  ;;  %v829_v0 = vadd.f32 %v825_v31, %v1423_v4  ;;  %v1263_v4 = vld [vmem:[%s1655_s3] sm:$0xff]   ;;  %s1361_s3 = smov 120  }
 0x612   :  { %831 = vadd.xlane.f32.xlu0 %v830_v36  ;;  %1233 = vmatpush3.bf16.msra.mxu1 %v1263_v4 }
 0x613   :  { %v833_v2 = vsel %vm49_vm1, %v829_v0, 0.0  ;;  %1234 = vmatprep.subr.bf16.mxu1 %v1357_v1  ;;  %v1016_v1 = vsub.s32 7, %v1435_v7 }
 0x615   :  { %v1017_v26 = vrot.slane %v1441_v9, %v1016_v1 }
 0x616   :  { %834 = vadd.xlane.f32.xlu0 %v833_v2  ;;  %1235 = vmatpush3.bf16.msra.mxu1 %v1264_v50 }
 0x69f   :  { %v832_v38 = vpop.xlane.xlu0 %831 }
 0x6a0   :  { %v837_v40 = vmul.f32 0.03125, %v832_v38 }
 0x6a2   :  { %v839_v41 = vsub.f32 %v828_v33, %v837_v40 }
 0x6a3   :  { %v835_v43 = vpop.xlane.xlu0 %834 }
 0x6a4   :  { %v838_v44 = vmul.f32 0.03125, %v835_v43  ;;  %v841_v46 = vmul.f32 %v839_v41, %v839_v41 }
 0x6a6   :  { %v840_v47 = vsub.f32 %v829_v0, %v838_v44  ;;  %v843_v48 = vsel %vm49_vm1, %v841_v46, 0.0 }
 0x6a7   :  { %844 = vadd.xlane.f32.xlu1 %v843_v48 }
 0x6a8   :  { %v842_v49 = vmul.f32 %v840_v47, %v840_v47 }
 0x6aa   :  { %v846_v3 = vsel %vm49_vm1, %v842_v49, 0.0 }
 0x6ab   :  { %847 = vadd.xlane.f32.xlu0 %v846_v3 }
 0x734   :  { %v845_v53 = vpop.xlane.xlu1 %844 }
 0x735   :  { %v849_v54 = vmul.f32 0.03125, %v845_v53 }
 0x737   :  { %v851_v57 = vadd.f32 1e-05, %v849_v54 }
 0x738   :  { %v848_v55 = vpop.xlane.xlu0 %847 }
 0x739   :  { %1301 = vrsqrt.f32 %v851_v57  ;;  %v850_v56 = vmul.f32 0.03125, %v848_v55 }
 0x73b   :  { %v852_v58 = vadd.f32 1e-05, %v850_v56 }
 0x73d   :  { %1303 = vrsqrt.f32 %v852_v58 }
 0x743   :  { %v1302_v60 = vpop.eup %1301 }
 0x744   :  { %v855_v62 = vmul.f32 %v1302_v60, %v839_v41 }
 0x746   :  { %v861_v5 = vmul.f32 %v860_v61, %v855_v62 }
 0x747   :  { %v1304_v63 = vpop.eup %1303 }
 0x748   :  { %v856_v6 = vmul.f32 %v1304_v63, %v840_v47  ;;  %v867_v11 = vadd.f32 %v866_v8, %v861_v5 }
 0x74a   :  { %v862_v10 = vmul.f32 %v860_v61, %v856_v6 }
 0x74c   :  { %v868_v12 = vadd.f32 %v866_v8, %v862_v10 }
 0x74e   :  { %v881_v42 = vpack.c.bf16 %v868_v12, %v867_v11 }
 0x750   :  { %1237 = vmatmul.mubr.msk.bf16.vlgmr.msra.gmra.mrb[24].mxu1 %vm49_vm1, %v881_v42 }
 0x823   :  { %v935_v17 = vpop.f32.mrb[24].mxu1 }
 0x824   :  { %v936_v18 = vadd.f32 %v935_v17, %v885_v16  ;;  %v1238_v19 = vpop.f32.mrb[25].mxu1 }
 0x825   :  { %v938_v20 = vpop.f32.mrb[26].mxu1 }
 0x826   :  { %v939_v21 = vadd.f32 %v938_v20, %v885_v16  ;;  %v1239_v22 = vpop.f32.mrb[27].mxu1  ;;  %v942_v23 = vmax.f32 %v936_v18, 0.0 }
 0x828   :  { %v943_v24 = vmax.f32 %v939_v21, 0.0 }
 0x82a   :  { %v944_v25 = vpack.c.bf16 %v943_v24, %v942_v23 }
 0x82c   :  { %1249 = vmatmul.mubr.msk.bf16.vlgmr.msra.gmra.mrb[16].mxu0 %vm969_vm9, %v944_v25 }
 0x8ff   :  { %v1007_v27 = vpop.f32.mrb[16].mxu0 }
 0x900   :  { %v1018_v28 = vadd.f32 %v1017_v26, %v1007_v27  ;;  %v1250_v29 = vpop.f32.mrb[17].mxu0 }
 0x901   :  { %v1010_v30 = vpop.f32.mrb[18].mxu0 }
 0x902   :  { %v1019_v31 = vadd.f32 %v1017_v26, %v1010_v30  ;;  %v1251_v32 = vpop.f32.mrb[19].mxu0  ;;  %v1020_v33 = vadd.f32 %v1018_v28, %v867_v11 }
 0x904   :  { %v1022_v36 = vsel %vm49_vm1, %v1020_v33, 0.0  ;;  %v1021_v0 = vadd.f32 %v1019_v31, %v868_v12 }
 0x905   :  { %1023 = vadd.xlane.f32.xlu0 %v1022_v36 }
 0x906   :  { %v1025_v2 = vsel %vm49_vm1, %v1021_v0, 0.0 }
 0x909   :  { %1026 = vadd.xlane.f32.xlu0 %v1025_v2 }
 0x992   :  { %v1024_v38 = vpop.xlane.xlu0 %1023 }
 0x993   :  { %v1028_v40 = vmul.f32 0.03125, %v1024_v38 }
 0x995   :  { %v1030_v41 = vsub.f32 %v1020_v33, %v1028_v40 }
 0x996   :  { %v1027_v43 = vpop.xlane.xlu0 %1026 }
 0x997   :  { %v1029_v44 = vmul.f32 0.03125, %v1027_v43  ;;  %v1032_v46 = vmul.f32 %v1030_v41, %v1030_v41 }
 0x999   :  { %v1031_v47 = vsub.f32 %v1021_v0, %v1029_v44  ;;  %v1034_v48 = vsel %vm49_vm1, %v1032_v46, 0.0 }
 0x99a   :  { %1035 = vadd.xlane.f32.xlu1 %v1034_v48 }
 0x99b   :  { %v1033_v49 = vmul.f32 %v1031_v47, %v1031_v47 }
 0x99d   :  { %v1037_v3 = vsel %vm49_vm1, %v1033_v49, 0.0 }
 0x99e   :  { %1038 = vadd.xlane.f32.xlu0 %v1037_v3 }
 0x9ab   :  { %551 = vrot.lane.b32.xlu1 %v1517_v37, %s1361_s3  ;;  %v1050_v37 = vsub.s32 4, %v1435_v7 }
 0x9af   :  { %555 = vrot.lane.b32.xlu1 %v1534_v34, %s1361_s3  ;;  %v1056_v34 = vsub.s32 5, %v1435_v7 }
 0x9b3   :  { %557 = vrot.lane.b32.xlu1 %v1545_v59, %s1361_s3  ;;  %v1051_v59 = vrot.slane %v1441_v9, %v1050_v37 }
 0x9b4   :  { %553 = vrot.lane.b32.xlu0 %v1523_v45, %s1361_s3 }
 0xa27   :  { %v1036_v4 = vpop.xlane.xlu1 %1035 }
 0xa28   :  { %v1040_v50 = vmul.f32 0.03125, %v1036_v4 }
 0xa2a   :  { %v1042_v51 = vadd.f32 1e-05, %v1040_v50 }
 0xa2b   :  { %v552_v52 = vpop.permute.xlu1 %551  ;;  %v1039_v53 = vpop.xlane.xlu0 %1038 }
 0xa2c   :  { %1305 = vrsqrt.f32 %v1042_v51  ;;  %564 = vst.msk [vmem:[#allocation4 + $0x20] sm:$0xff] %vm174_vm4, %v552_v52  ;;  %v1041_v54 = vmul.f32 0.03125, %v1039_v53 }
 0xa2e   :  { %v1043_v57 = vadd.f32 1e-05, %v1041_v54 }
 0xa2f   :  { %v556_v55 = vpop.permute.xlu1 %555  ;;  %v554_v56 = vpop.permute.xlu0 %553 }
 0xa30   :  { %1307 = vrsqrt.f32 %v1043_v57  ;;  %566 = vst.msk [vmem:[#allocation4 + $0x30] sm:$0xff] %vm174_vm4, %v556_v55  ;;  %565 = vst.msk [vmem:[#allocation4 + $0x28] sm:$0xff] %vm174_vm4, %v554_v56 }
 0xa33   :  { %v558_v45 = vpop.permute.xlu1 %557 }
 0xa34   :  { %567 = vst.msk [vmem:[#allocation4 + $0x38] sm:$0xff] %vm174_vm4, %v558_v45 }
 0xa35   :  { %1320 = shalt.err (!%p1317_p4)
}
 0xa36   :  { %s1321_s2 = scalar_lea.hbm %s1658_s6, 1024 }
 0xa37   :  { %p1322_p5 = scmp.ne.s32.totalorder %s1658_s6, %s1321_s2  ;;  %p1325_p6 = scmp.lt.u32.totalorder %s1321_s2, %s1658_s6 }
 0xa39   :  { %p1327_p7 = pnand %p1325_p6, %p1322_p5 }
 0xa3b   :  { %1330 = shalt.err (!%p1327_p7)
}
 0xa3c   :  { %s1363_s9 = smov 128   ;;  %v1306_v7 = vpop.eup %1305  ;;  %v1057_v35 = vrot.slane %v1441_v9, %v1056_v34  ;;  %s1364_s12 = smov [#allocation2]  }
 0xa3d   :  { %1085 = dma.vmem_to_hbm [thread:$0]  %s1080_s26, 1024, %s1658_s6, [#allocation5], %s1363_s9, %s1363_s9, %s1359_s8   ;;  %v1046_v58 = vmul.f32 %v1306_v7, %v1030_v41  ;;  %v1308_v61 = vpop.eup %1307 }
 0xa3e   :  { %v1047_v62 = vmul.f32 %v1308_v61, %v1031_v47  ;;  %s1067_s1 = sshll.u32 %s1364_s12, 4  ;;  %s1068_s1 = int_to_ptr.vmem [resolvable:$true] %s1067_s1 }
 0xa3f   :  { %v1052_v60 = vmul.f32 %v1051_v59, %v1046_v58  ;;  %s1331_s13 = scalar_lea.vmem %s1068_s1, 256  ;;  %p1336_p9 = scmp.lt.s32.totalorder %s1068_s1, %s1068_s1 }
 0xa40   :  { %v1053_v63 = vmul.f32 %v1051_v59, %v1047_v62  ;;  %p1332_p8 = scmp.ne.s32.totalorder %s1068_s1, %s1331_s13  ;;  %p1337_p10 = scmp.lt.s32.totalorder %s1331_s13, %s1331_s13 }
 0xa41   :  { %v1058_v39 = vadd.f32 %v1057_v35, %v1052_v60 }
 0xa42   :  { %v1059_v5 = vadd.f32 %v1057_v35, %v1053_v63  ;;  %p1338_p11 = por %p1337_p10, %p1336_p9 }
 0xa43   :  { %1060 = vst.msk [vmem:[#allocation2] sm:$0xff] %vm49_vm1, %v1058_v39 }
 0xa44   :  { %1061 = vst.msk [vmem:[#allocation2 + $0x8] sm:$0xff] %vm49_vm1, %v1059_v5  ;;  %p1339_p12 = pnand %p1338_p11, %p1332_p8 }
 0xa46   :  { %1342 = shalt.err (!%p1339_p12)
}
 0xa47   :  { %s1343_s15 = scalar_lea.hbm %s1657_s5, 256 }
 0xa48   :  { %p1344_p13 = scmp.ne.s32.totalorder %s1657_s5, %s1343_s15  ;;  %p1347_p0 = scmp.lt.u32.totalorder %s1343_s15, %s1657_s5 }
 0xa4a   :  { %p1349_p1 = pnand %p1347_p0, %p1344_p13 }
 0xa4c   :  { %1352 = shalt.err (!%p1349_p1)
}
 0xa4d   :  { %1073 = dma.vmem_to_hbm [thread:$0]  %s1068_s1, 256, %s1657_s5, [#allocation3], %s1363_s9, %s1363_s9, %s1359_s8  }
 0xa4e   :  { %1353 = dma.done.wait [#allocation3], 256  }
 0xa4f   :  { %1354 = vsyncadd [#allocation3], 4294967040 }
 0xa50   :  { %1355 = dma.done.wait [#allocation5], 1024  }
 0xa51   :  { %1356 = vsyncadd [#allocation5], 4294966272 }
 0xa52   :  { %1092 = vsyncpa [#allocation3], 1 }
 0xa53   :  { %1093 = vsyncpa [#allocation5], 1 }

</bundles_post_ra>
